<compile_context>
chip_gen: v7x
topology: tpu7x:2x2x1
jax: 0.10.0
libtpu: 0.0.40
codegen_flags: <defaults>
</compile_context>

<pallas_src>
import functools

import jax
import jax.numpy as jnp
from jax.experimental import pallas as pl
from jax.experimental.pallas import tpu as pltpu


def _round_up(n, m):
    return (n + m - 1) // m * m


def _default_act_dtype():
    # bf16 transcendentals are a win on v6e/v7x (bf16 EUP/VPU); v5e and older
    # have no bf16 EUP path, so keep activations in f32 there.
    try:
        kind = jax.devices()[0].device_kind.lower()
    except Exception:
        return jnp.float32
    if "v6" in kind or "v7" in kind:
        return jnp.bfloat16
    return jnp.float32


def full4_kernel(x_ref, w1_ref, b1_ref, w2_ref, b2_ref, w3_ref, b3_ref,
                 w4t_ref, b4_ref, out_ref, *, act_dtype):
    x = x_ref[...]                       # (TB, 2) f32
    w1 = w1_ref[...]                     # (2, H)  f32
    b1 = b1_ref[...]                     # (1, H)  f32

    # Layer 1: K=2 contraction as two broadcast FMAs on the VPU (skip the MXU).
    z1 = x[:, 0:1] * w1[0:1, :] + x[:, 1:2] * w1[1:2, :] + b1        # (TB, H) f32
    h1 = jnp.tanh(z1.astype(act_dtype))                              # (TB, H)

    # Layer 2: (TB,H) @ (H,H) on the MXU, f32 accumulation.
    z2 = jnp.dot(h1, w2_ref[...].astype(act_dtype),
                 preferred_element_type=jnp.float32) + b2_ref[...]
    h2 = jnp.tanh(z2.astype(act_dtype))

    # Layer 3: (TB,H) @ (H,H) on the MXU, f32 accumulation.
    z3 = jnp.dot(h2, w3_ref[...].astype(act_dtype),
                 preferred_element_type=jnp.float32) + b3_ref[...]
    h3 = jnp.tanh(z3.astype(act_dtype))

    # Output layer: N=1 as VPU multiply + XLU lane reduction (skip the MXU).
    z4 = (jnp.sum(h3.astype(jnp.float32) * w4t_ref[...],
                  axis=-1, keepdims=True)
          + b4_ref[0, 0])                                            # (TB, 1) f32
    out_ref[...] = jax.nn.sigmoid(z4).astype(out_ref.dtype)


def full4_forward(x, params, *, act_dtype=None, max_tile=2048):
    """x: (B, 2) float32. params: dict of w1,b1,...,w4,b4. Returns (B, 1) f32.

    Weights are stored as (in_features, out_features), so the kernel computes
    x @ W + b, numerically identical to torch.nn.Linear (x @ W_pt.T + b).
    """
    if act_dtype is None:
        act_dtype = _default_act_dtype()

    B = x.shape[0]
    hid = params["w1"].shape[1]

    # Batch tile: large multiple of 8 (f32 sublane), capped so double-buffered
    # x/out blocks + weights stay tiny vs. VMEM on every generation.
    TB = min(max_tile, _round_up(B, 8))
    Bp = _round_up(B, TB)
    if Bp != B:
        x = jnp.pad(x, ((0, Bp - B), (0, 0)))   # padded rows are discarded below
    grid = (Bp // TB,)

    w4_t = params["w4"].reshape(1, hid) if params["w4"].shape == (hid, 1) \
        else params["w4"].T  # (1, H) for the lane-reduction output layer
    # (params["w4"] is (hid, 1); reshape is the cheap transpose here.)

    const2d = lambda shape: pl.BlockSpec(shape, lambda i: (0, 0))

    flops = 2 * Bp * (2 * hid + 2 * hid * hid + hid)
    transcendentals = Bp * (3 * hid + 1)
    weight_bytes = 4 * (2 * hid + hid + 2 * (hid * hid + hid) + hid + 1)
    bytes_accessed = 4 * (Bp * 2 + Bp * 1) + weight_bytes

    out = pl.pallas_call(
        functools.partial(full4_kernel, act_dtype=act_dtype),
        out_shape=jax.ShapeDtypeStruct((Bp, 1), jnp.float32),
        grid=grid,
        in_specs=[
            pl.BlockSpec((TB, 2), lambda i: (i, 0)),          # x (batch-tiled)
            const2d((2, hid)),                                # w1
            const2d((1, hid)),                                # b1
            const2d((hid, hid)),                              # w2
            const2d((1, hid)),                                # b2
            const2d((hid, hid)),                              # w3
            const2d((1, hid)),                                # b3
            const2d((1, hid)),                                # w4 (transposed)
            pl.BlockSpec(memory_space=pltpu.MemorySpace.SMEM),  # b4 scalar
        ],
        out_specs=pl.BlockSpec((TB, 1), lambda i: (i, 0)),
        compiler_params=pltpu.CompilerParams(
            dimension_semantics=("parallel",),
            vmem_limit_bytes=32 * 1024 * 1024,
        ),
        cost_estimate=pl.CostEstimate(
            flops=flops,
            transcendentals=transcendentals,
            bytes_accessed=bytes_accessed,
        ),
    )(x,
      params["w1"], params["b1"],
      params["w2"], params["b2"],
      params["w3"], params["b3"],
      w4_t, params["b4"])

    return out[:B]


def init_params(key, hid):
    """Deterministic init mimicking torch.nn.Linear default U[-1/sqrt(fan_in), +1/sqrt(fan_in)].

    Weights are stored as (in_features, out_features) for the x @ W convention.
    """
    keys = jax.random.split(key, 8)

    def uniform(k, shape, fan_in):
        bound = 1.0 / jnp.sqrt(jnp.float32(fan_in))
        return jax.random.uniform(k, shape, jnp.float32, -bound, bound)

    return {
        "w1": uniform(keys[0], (2, hid), 2),
        "b1": uniform(keys[1], (1, hid), 2),
        "w2": uniform(keys[2], (hid, hid), hid),
        "b2": uniform(keys[3], (1, hid), hid),
        "w3": uniform(keys[4], (hid, hid), hid),
        "b3": uniform(keys[5], (1, hid), hid),
        "w4": uniform(keys[6], (hid, 1), hid),
        "b4": uniform(keys[7], (1, 1), hid),
    }


def full4_ref(x, p):
    """Pure-JAX f32 reference for sanity checking."""
    h1 = jnp.tanh(x @ p["w1"] + p["b1"])
    h2 = jnp.tanh(h1 @ p["w2"] + p["b2"])
    h3 = jnp.tanh(h2 @ p["w3"] + p["b3"])
    return jax.nn.sigmoid(h3 @ p["w4"] + p["b4"])


if __name__ == "__main__":
    key = jax.random.PRNGKey(0)
    k_x, k_p, k_x2 = jax.random.split(key, 3)

    batch, hid = 8, 32
    x = jax.random.normal(k_x, (batch, 2), dtype=jnp.float32)
    params = init_params(k_p, hid)

    # 1) Strict f32 check (single grid step).
    out_f32 = jax.block_until_ready(full4_forward(x, params, act_dtype=jnp.float32))
    ref = full4_ref(x, params)
    assert out_f32.shape == (batch, 1), out_f32.shape
    assert jnp.allclose(out_f32, ref, atol=1e-5, rtol=1e-5), "f32 mismatch vs reference"

    # 2) Device-tuned path (bf16 activations on v6e/v7x, f32 on v5e), looser tol.
    out_fast = jax.block_until_ready(full4_forward(x, params))
    assert jnp.allclose(out_fast, ref, atol=5e-2), "fast-path mismatch vs reference"

    # 3) Multi-step grid + batch padding path (B not a multiple of the tile).
    big_batch = 2075
    x_big = jax.random.normal(k_x2, (big_batch, 2), dtype=jnp.float32)
    out_big = jax.block_until_ready(
        full4_forward(x_big, params, act_dtype=jnp.float32))
    ref_big = full4_ref(x_big, params)
    assert out_big.shape == (big_batch, 1), out_big.shape
    assert jnp.allclose(out_big, ref_big, atol=1e-5, rtol=1e-5), "tiled mismatch vs reference"

    print("KERNEL_OK")
</pallas_src>

<mosaic_0001>
module attributes {stable_mosaic.version = 11 : i64} {
  func.func @full4_kernel(%arg0: i32, %arg1: memref<8x2xf32, #tpu.memory_space<vmem>>, %arg2: memref<2x32xf32, #tpu.memory_space<vmem>>, %arg3: memref<1x32xf32, #tpu.memory_space<vmem>>, %arg4: memref<32x32xf32, #tpu.memory_space<vmem>>, %arg5: memref<1x32xf32, #tpu.memory_space<vmem>>, %arg6: memref<32x32xf32, #tpu.memory_space<vmem>>, %arg7: memref<1x32xf32, #tpu.memory_space<vmem>>, %arg8: memref<1x32xf32, #tpu.memory_space<vmem>>, %arg9: memref<1x1xf32, #tpu.memory_space<smem>>, %arg10: memref<8x1xf32, #tpu.memory_space<vmem>>) attributes {dimension_semantics = [#tpu.dimension_semantics<parallel>], iteration_bounds = array<i64: 1>, scalar_prefetch = 0 : i64, scratch_operands = 0 : i64, tpu.core_type = #tpu.core_type<tc>, window_params = [{transform_indices = @transform_0, window_bounds = array<i64: 8, 2>}, {pipeline_mode = #tpu.pipeline_mode<synchronous>, transform_indices = @transform_1, window_bounds = array<i64: 2, 32>}, {pipeline_mode = #tpu.pipeline_mode<synchronous>, transform_indices = @transform_2, window_bounds = array<i64: 1, 32>}, {pipeline_mode = #tpu.pipeline_mode<synchronous>, transform_indices = @transform_3, window_bounds = array<i64: 32, 32>}, {pipeline_mode = #tpu.pipeline_mode<synchronous>, transform_indices = @transform_4, window_bounds = array<i64: 1, 32>}, {pipeline_mode = #tpu.pipeline_mode<synchronous>, transform_indices = @transform_5, window_bounds = array<i64: 32, 32>}, {pipeline_mode = #tpu.pipeline_mode<synchronous>, transform_indices = @transform_6, window_bounds = array<i64: 1, 32>}, {pipeline_mode = #tpu.pipeline_mode<synchronous>, transform_indices = @transform_7, window_bounds = array<i64: 1, 32>}, {transform_indices = @transform_8, window_bounds = array<i64: 1, 1>}, {transform_indices = @transform_9, window_bounds = array<i64: 8, 1>}]} {
    %c0 = arith.constant 0 : index
    %c0_0 = arith.constant 0 : index
    %0 = vector.load %arg1[%c0, %c0_0] : memref<8x2xf32, #tpu.memory_space<vmem>>, vector<8x2xf32>
    %c0_1 = arith.constant 0 : index
    %c0_2 = arith.constant 0 : index
    %1 = vector.load %arg2[%c0_1, %c0_2] : memref<2x32xf32, #tpu.memory_space<vmem>>, vector<2x32xf32>
    %c0_3 = arith.constant 0 : index
    %c0_4 = arith.constant 0 : index
    %2 = vector.load %arg3[%c0_3, %c0_4] : memref<1x32xf32, #tpu.memory_space<vmem>>, vector<1x32xf32>
    %3 = vector.extract_strided_slice %0 {offsets = [0, 0], sizes = [8, 1], strides = [1, 1]} : vector<8x2xf32> to vector<8x1xf32>
    %4 = vector.extract_strided_slice %1 {offsets = [0, 0], sizes = [1, 32], strides = [1, 1]} : vector<2x32xf32> to vector<1x32xf32>
    %5 = vector.broadcast %3 : vector<8x1xf32> to vector<8x32xf32>
    %6 = vector.broadcast %4 : vector<1x32xf32> to vector<8x32xf32>
    %7 = arith.mulf %5, %6 : vector<8x32xf32>
    %8 = vector.extract_strided_slice %0 {offsets = [0, 1], sizes = [8, 1], strides = [1, 1]} : vector<8x2xf32> to vector<8x1xf32>
    %9 = vector.extract_strided_slice %1 {offsets = [1, 0], sizes = [1, 32], strides = [1, 1]} : vector<2x32xf32> to vector<1x32xf32>
    %10 = vector.broadcast %8 : vector<8x1xf32> to vector<8x32xf32>
    %11 = vector.broadcast %9 : vector<1x32xf32> to vector<8x32xf32>
    %12 = arith.mulf %10, %11 : vector<8x32xf32>
    %13 = arith.addf %7, %12 : vector<8x32xf32>
    %14 = vector.broadcast %2 : vector<1x32xf32> to vector<8x32xf32>
    %15 = arith.addf %13, %14 : vector<8x32xf32>
    %16 = math.tanh %15 : vector<8x32xf32>
    %c0_5 = arith.constant 0 : index
    %c0_6 = arith.constant 0 : index
    %17 = vector.load %arg4[%c0_5, %c0_6] : memref<32x32xf32, #tpu.memory_space<vmem>>, vector<32x32xf32>
    %cst = arith.constant dense<0.000000e+00> : vector<8x32xf32>
    %18 = tpu.matmul %16, %17, %cst {dimension_numbers = #tpu.dot_dimension_numbers<[1], [0], [0], [1], [0, 0, 1, 1], [], []>} : vector<8x32xf32>, vector<32x32xf32>, vector<8x32xf32> -> vector<8x32xf32>
    %c0_7 = arith.constant 0 : index
    %c0_8 = arith.constant 0 : index
    %19 = vector.load %arg5[%c0_7, %c0_8] : memref<1x32xf32, #tpu.memory_space<vmem>>, vector<1x32xf32>
    %20 = vector.broadcast %19 : vector<1x32xf32> to vector<8x32xf32>
    %21 = arith.addf %18, %20 : vector<8x32xf32>
    %22 = math.tanh %21 : vector<8x32xf32>
    %c0_9 = arith.constant 0 : index
    %c0_10 = arith.constant 0 : index
    %23 = vector.load %arg6[%c0_9, %c0_10] : memref<32x32xf32, #tpu.memory_space<vmem>>, vector<32x32xf32>
    %cst_11 = arith.constant dense<0.000000e+00> : vector<8x32xf32>
    %24 = tpu.matmul %22, %23, %cst_11 {dimension_numbers = #tpu.dot_dimension_numbers<[1], [0], [0], [1], [0, 0, 1, 1], [], []>} : vector<8x32xf32>, vector<32x32xf32>, vector<8x32xf32> -> vector<8x32xf32>
    %c0_12 = arith.constant 0 : index
    %c0_13 = arith.constant 0 : index
    %25 = vector.load %arg7[%c0_12, %c0_13] : memref<1x32xf32, #tpu.memory_space<vmem>>, vector<1x32xf32>
    %26 = vector.broadcast %25 : vector<1x32xf32> to vector<8x32xf32>
    %27 = arith.addf %24, %26 : vector<8x32xf32>
    %28 = math.tanh %27 : vector<8x32xf32>
    %c0_14 = arith.constant 0 : index
    %c0_15 = arith.constant 0 : index
    %29 = vector.load %arg8[%c0_14, %c0_15] : memref<1x32xf32, #tpu.memory_space<vmem>>, vector<1x32xf32>
    %30 = vector.broadcast %29 : vector<1x32xf32> to vector<8x32xf32>
    %31 = arith.mulf %28, %30 : vector<8x32xf32>
    %cst_16 = arith.constant dense<0.000000e+00> : vector<8xf32>
    %32 = vector.multi_reduction <add>, %31, %cst_16 [1] : vector<8x32xf32> to vector<8xf32>
    %33 = vector.shape_cast %32 : vector<8xf32> to vector<8x1xf32>
    %c0_17 = arith.constant 0 : index
    %c0_18 = arith.constant 0 : index
    %34 = memref.load %arg9[%c0_17, %c0_18] : memref<1x1xf32, #tpu.memory_space<smem>>
    %35 = vector.broadcast %34 : f32 to vector<8x1xf32>
    %36 = arith.addf %33, %35 : vector<8x1xf32>
    %37 = arith.negf %36 : vector<8x1xf32>
    %38 = math.exp %37 : vector<8x1xf32>
    %cst_19 = arith.constant 1.000000e+00 : f32
    %39 = vector.broadcast %cst_19 : f32 to vector<8x1xf32>
    %40 = arith.addf %39, %38 : vector<8x1xf32>
    %41 = arith.divf %39, %40 : vector<8x1xf32>
    %c0_20 = arith.constant 0 : index
    %c0_21 = arith.constant 0 : index
    %42 = vector.load %arg10[%c0_20, %c0_21] : memref<8x1xf32, #tpu.memory_space<vmem>>, vector<8x1xf32>
    tpu.vector_store %arg10[%c0_20, %c0_21], %41 {strides = array<i32>} : memref<8x1xf32, #tpu.memory_space<vmem>>, vector<8x1xf32>,
    return
  }
  func.func @transform_0(%arg0: i32) -> (i32, i32) {
    %c0_i32 = arith.constant 0 : i32
    %c0_i32_0 = arith.constant 0 : i32
    return %arg0, %c0_i32 : i32, i32
  }
  func.func @transform_1(%arg0: i32) -> (i32, i32) {
    %c0_i32 = arith.constant 0 : i32
    %c0_i32_0 = arith.constant 0 : i32
    %c0_i32_1 = arith.constant 0 : i32
    return %c0_i32, %c0_i32_0 : i32, i32
  }
  func.func @transform_2(%arg0: i32) -> (i32, i32) {
    %c0_i32 = arith.constant 0 : i32
    %c0_i32_0 = arith.constant 0 : i32
    %c0_i32_1 = arith.constant 0 : i32
    return %c0_i32, %c0_i32_0 : i32, i32
  }
  func.func @transform_3(%arg0: i32) -> (i32, i32) {
    %c0_i32 = arith.constant 0 : i32
    %c0_i32_0 = arith.constant 0 : i32
    %c0_i32_1 = arith.constant 0 : i32
    return %c0_i32, %c0_i32_0 : i32, i32
  }
  func.func @transform_4(%arg0: i32) -> (i32, i32) {
    %c0_i32 = arith.constant 0 : i32
    %c0_i32_0 = arith.constant 0 : i32
    %c0_i32_1 = arith.constant 0 : i32
    return %c0_i32, %c0_i32_0 : i32, i32
  }
  func.func @transform_5(%arg0: i32) -> (i32, i32) {
    %c0_i32 = arith.constant 0 : i32
    %c0_i32_0 = arith.constant 0 : i32
    %c0_i32_1 = arith.constant 0 : i32
    return %c0_i32, %c0_i32_0 : i32, i32
  }
  func.func @transform_6(%arg0: i32) -> (i32, i32) {
    %c0_i32 = arith.constant 0 : i32
    %c0_i32_0 = arith.constant 0 : i32
    %c0_i32_1 = arith.constant 0 : i32
    return %c0_i32, %c0_i32_0 : i32, i32
  }
  func.func @transform_7(%arg0: i32) -> (i32, i32) {
    %c0_i32 = arith.constant 0 : i32
    %c0_i32_0 = arith.constant 0 : i32
    %c0_i32_1 = arith.constant 0 : i32
    return %c0_i32, %c0_i32_0 : i32, i32
  }
  func.func @transform_8(%arg0: i32) -> (i32, i32) {
    %c0_i32 = arith.constant 0 : i32
    %c0_i32_0 = arith.constant 0 : i32
    %c0_i32_1 = arith.constant 0 : i32
    return %c0_i32, %c0_i32_0 : i32, i32
  }
  func.func @transform_9(%arg0: i32) -> (i32, i32) {
    %c0_i32 = arith.constant 0 : i32
    %c0_i32_0 = arith.constant 0 : i32
    return %arg0, %c0_i32 : i32, i32
  }
}

</mosaic_0001>

<bundles_post_ra>
// kernel: tpu_custom_call.1
= control target key start
LH: loop header
LB: loop body
LE: loop exit
PB: predicated region body
PF: predicated region fallthrough
CT: control target
= control target key end

     0   :  { %15 = vsyncpa [#allocation4], 0  ;;  %s620_s0 = inlined_call_operand.vmem [shape: f32[8,2], index: 0, kind: input, shape index: {}]   ;;  %s621_s1 = inlined_call_operand.hbm [shape: f32[2,32], index: 1, kind: input, shape index: {}]   ;;  %s622_s2 = inlined_call_operand.hbm [shape: f32[1,32], index: 2, kind: input, shape index: {}]   ;;  %s623_s3 = inlined_call_operand.hbm [shape: f32[32,32], index: 3, kind: input, shape index: {}]   ;;  %s624_s4 = inlined_call_operand.hbm [shape: f32[1,32], index: 4, kind: input, shape index: {}]   ;;  %s625_s5 = inlined_call_operand.vmem [shape: f32[32,32], index: 5, kind: input, shape index: {}]   ;;  %s626_s6 = inlined_call_operand.vmem [shape: f32[1,32], index: 6, kind: input, shape index: {}]   ;;  %s627_s7 = inlined_call_operand.vmem [shape: f32[1,32], index: 7, kind: input, shape index: {}]   ;;  %s628_s8 = inlined_call_operand.<no memory space> [shape: f32[1,1], index: 8, kind: input, shape index: {}]   ;;  %s629_s9 = inlined_call_operand.vmem [shape: f32[8,1], index: 9, kind: output, shape index: {}]  }
   0x1   :  { %16 = vsyncpa [#allocation6], 0 }
   0x2   :  { %17 = vsyncpa [#allocation9], 0  ;;  %s481_s30 = smov [#allocation5]   ;;  %s482_s11 = smov [#allocation3]  }
   0x3   :  { %s36_s10 = sshll.u32 %s481_s30, 4  ;;  %s26_s12 = sshll.u32 %s482_s11, 4  ;;  %s37_s10 = int_to_ptr.vmem [resolvable:$true] %s36_s10  ;;  %s27_s12 = int_to_ptr.vmem [resolvable:$true] %s26_s12 }
   0x4   :  { %s387_s15 = scalar_lea.hbm %s622_s2, 16 }
   0x5   :  { %p388_p0 = scmp.ne.s32.totalorder %s622_s2, %s387_s15  ;;  %p391_p1 = scmp.lt.u32.totalorder %s387_s15, %s622_s2 }
   0x7   :  { %p393_p2 = pnand %p391_p1, %p388_p0 }
   0x9   :  { %396 = shalt.err (!%p393_p2)
}
   0xa   :  { %s397_s20 = scalar_lea.vmem %s37_s10, 16  ;;  %s401_s21 = scalar_lea.vmem %s37_s10, 32 }
   0xb   :  { %p398_p3 = scmp.ne.s32.totalorder %s37_s10, %s397_s20  ;;  %p402_p4 = scmp.lt.s32.totalorder %s37_s10, %s37_s10 }
   0xc   :  { %p403_p5 = scmp.lt.s32.totalorder %s401_s21, %s397_s20 }
   0xe   :  { %p404_p6 = por %p403_p5, %p402_p4 }
  0x10   :  { %p405_p7 = pnand %p404_p6, %p398_p3 }
  0x12   :  { %408 = shalt.err (!%p405_p7)
}
  0x13   :  { %39 = dma.hbm_to_vmem [thread:$0]  %s622_s2, 16, %s37_s10, [#allocation6]  }
  0x14   :  { %s409_s26 = scalar_lea.hbm %s621_s1, 32 }
  0x15   :  { %p410_p8 = scmp.ne.s32.totalorder %s621_s1, %s409_s26  ;;  %p413_p9 = scmp.lt.u32.totalorder %s409_s26, %s621_s1 }
  0x17   :  { %p415_p10 = pnand %p413_p9, %p410_p8 }
  0x19   :  { %418 = shalt.err (!%p415_p10)
}
  0x1a   :  { %s419_s11 = scalar_lea.vmem %s27_s12, 32  ;;  %p424_p12 = scmp.lt.s32.totalorder %s27_s12, %s27_s12 }
  0x1b   :  { %p420_p11 = scmp.ne.s32.totalorder %s27_s12, %s419_s11  ;;  %p425_p13 = scmp.lt.s32.totalorder %s419_s11, %s419_s11 }
  0x1d   :  { %p426_p0 = por %p425_p13, %p424_p12 }
  0x1f   :  { %p427_p1 = pnand %p426_p0, %p420_p11 }
  0x21   :  { %430 = shalt.err (!%p427_p1)
}
  0x22   :  { %29 = dma.hbm_to_vmem [thread:$0]  %s621_s1, 32, %s27_s12, [#allocation4]  }
  0x23   :  { %s483_s13 = smov [#allocation7]   ;;  %s431_s17 = scalar_lea.hbm %s623_s3, 512 }
  0x24   :  { %s45_s14 = sshll.u32 %s483_s13, 4  ;;  %p432_p2 = scmp.ne.s32.totalorder %s623_s3, %s431_s17  ;;  %s46_s14 = int_to_ptr.vmem [resolvable:$true] %s45_s14 }
  0x25   :  { %p435_p3 = scmp.lt.u32.totalorder %s431_s17, %s623_s3 }
  0x27   :  { %p437_p4 = pnand %p435_p3, %p432_p2 }
  0x29   :  { %440 = shalt.err (!%p437_p4)
}
  0x2a   :  { %s441_s22 = scalar_lea.vmem %s46_s14, 512  ;;  %p446_p6 = scmp.lt.s32.totalorder %s46_s14, %s46_s14 }
  0x2b   :  { %p442_p5 = scmp.ne.s32.totalorder %s46_s14, %s441_s22  ;;  %p447_p7 = scmp.lt.s32.totalorder %s441_s22, %s441_s22 }
  0x2d   :  { %p448_p8 = por %p447_p7, %p446_p6 }
  0x2f   :  { %p449_p9 = pnand %p448_p8, %p442_p5 }
  0x31   :  { %452 = shalt.err (!%p449_p9)
}
  0x32   :  { %s484_s1 = smov 128   ;;  %s485_s12 = smov 8  }
  0x33   :  { %51 = dma.hbm_to_vmem [thread:$0]  %s623_s3, 512, %s46_s14, [#allocation6], %s484_s1, %s484_s1, %s485_s12  }
  0x34   :  { %s486_s25 = smov [#allocation8]   ;;  %s453_s29 = scalar_lea.hbm %s624_s4, 16 }
  0x35   :  { %s58_s26 = sshll.u32 %s486_s25, 4  ;;  %p454_p10 = scmp.ne.s32.totalorder %s624_s4, %s453_s29  ;;  %s59_s26 = int_to_ptr.vmem [resolvable:$true] %s58_s26 }
  0x36   :  { %p457_p11 = scmp.lt.u32.totalorder %s453_s29, %s624_s4 }
  0x38   :  { %p459_p12 = pnand %p457_p11, %p454_p10 }
  0x3a   :  { %462 = shalt.err (!%p459_p12)
}
  0x3b   :  { %s463_s13 = scalar_lea.vmem %s59_s26, 16  ;;  %s467_s3 = scalar_lea.vmem %s59_s26, 32 }
  0x3c   :  { %p464_p13 = scmp.ne.s32.totalorder %s59_s26, %s463_s13  ;;  %p468_p0 = scmp.lt.s32.totalorder %s59_s26, %s59_s26 }
  0x3d   :  { %p469_p1 = scmp.lt.s32.totalorder %s467_s3, %s463_s13 }
  0x3f   :  { %p470_p2 = por %p469_p1, %p468_p0 }
  0x41   :  { %p471_p3 = pnand %p470_p2, %p464_p13 }
  0x43   :  { %474 = shalt.err (!%p471_p3)
}
  0x44   :  { %61 = dma.hbm_to_vmem [thread:$0]  %s624_s4, 16, %s59_s26, [#allocation9]  }
  0x45   :  { %475 = dma.done.wait [#allocation4], 32  }
  0x46   :  { %476 = vsyncadd [#allocation4], 4294967264 }
  0x47   :  { %477 = dma.done.wait [#allocation6], 528  }
  0x48   :  { %478 = vsyncadd [#allocation6], 4294966768 }
  0x49   :  { %479 = dma.done.wait [#allocation9], 16  }
  0x4a   :  { %480 = vsyncadd [#allocation9], 4294967280  ;;  %v487_v0 = vmov 0   ;;  %v82_v1 = vld [vmem:[%s620_s0] sm:$0xff]  ;;  %v488_v2 = vmov 1   ;;  %v114_v4 = vld [vmem:[#allocation7 + $0x8] sm:$0xff]  ;;  %v90_v11 = vlaneseq  ;;  %v296_v45 = vstv %s628_s8 }
  0x4b   :  { %375 = vset.pattern.permute.xlu0 %v487_v0  ;;  %v113_v3 = vld [vmem:[#allocation7] sm:$0xff]  ;;  %v115_v5 = vld [vmem:[#allocation7 + $0x10] sm:$0xff]  ;;  %v489_v6 = vmov 0.0|0.0   ;;  %v116_v8 = vld [vmem:[#allocation7 + $0x18] sm:$0xff]  ;;  %vm490_vm0 = vmmov 0   ;;  %v491_v9 = vmov 0.0  }
  0x4c   :  { %87 = vperm.xlu0 %375, %v82_v1   ;;  %352 = vmatprep.subr.bf16.mxu0 %v489_v6  ;;  %v353_v7 = vpack.c.bf16 %v114_v4, %v113_v3  ;;  %v356_v10 = vpack.c.bf16 %v116_v8, %v115_v5  ;;  %v91_v12 = vshrl.u32 %v90_v11, 7  ;;  %v83_v15 = vld [vmem:[#allocation3] sm:$0x3]  ;;  %v313_v22 = vld [vmem:[#allocation5] ss:$0 sm:$0xff]  ;;  %vm124_vm1 = vcmask 261120  }
  0x4d   :  { %338 = vmatprep.mubr.msk.f32.mxu0 %vm490_vm0, %v491_v9  ;;  %358 = vmatprep.subr.bf16.mxu1 %v489_v6  ;;  %v199_v26 = vld [vmem:[%s625_s5] sm:$0xff]  ;;  %v200_v27 = vld [vmem:[%s625_s5 + $0x8] sm:$0xff]  ;;  %v201_v28 = vld [vmem:[%s625_s5 + $0x10] sm:$0xff]  ;;  %vm304_vm2 = vcmask 7168  }
  0x4e   :  { %349 = vmatprep.mubr.msk.f32.mxu1 %vm490_vm0, %v491_v9  ;;  %354 = vmatpush3.bf16.msra.mxu0 %v353_v7  ;;  %v92_v13 = vsub.s32 0, %v91_v12  ;;  %v101_v14 = vsub.s32 1, %v91_v12  ;;  %v359_v29 = vpack.c.bf16 %v200_v27, %v199_v26  ;;  %v202_v30 = vld [vmem:[%s625_s5 + $0x18] sm:$0xff]  ;;  %v314_v32 = vld [vmem:[#allocation8] ss:$0 sm:$0xff] }
  0x4f   :  { %355 = vmatprep.subr.bf16.mxu0 %v489_v6  ;;  %v362_v31 = vpack.c.bf16 %v202_v30, %v201_v28  ;;  %v316_v37 = vld [vmem:[%s626_s6] ss:$0 sm:$0xff] }
  0x50   :  { %376 = vset.pattern.permute.xlu0 %v488_v2  ;;  %v93_v17 = vrot.slane %v83_v15, %v92_v13  ;;  %v102_v18 = vrot.slane %v83_v15, %v101_v14  ;;  %360 = vmatpush3.bf16.msra.mxu1 %v359_v29  ;;  %v318_v41 = vld [vmem:[%s627_s7] ss:$0 sm:$0xff] }
  0x51   :  { %96 = vperm.xlu0 %376, %v82_v1   ;;  %361 = vmatprep.subr.bf16.mxu1 %v489_v6 }
  0x52   :  { %357 = vmatpush3.bf16.msra.mxu0 %v356_v10 }
  0x54   :  { %363 = vmatpush3.bf16.msra.mxu1 %v362_v31 }
  0xcb   :  { %v88_v16 = vpop.permute.xlu0 %87 }
  0xcc   :  { %v94_v20 = vmul.f32 %v93_v17, %v88_v16 }
  0xd0   :  { %v97_v19 = vpop.permute.xlu0 %96 }
  0xd1   :  { %v103_v21 = vmul.f32 %v102_v18, %v97_v19 }
  0xd3   :  { %v104_v23 = vadd.f32 %v103_v21, %v94_v20 }
  0xd5   :  { %v111_v24 = vadd.f32 %v313_v22, %v104_v23 }
  0xd7   :  { %377 = vtanh.f32 %v111_v24 }
  0xe1   :  { %v378_v25 = vpop.eup %377 }
  0xe2   :  { %339 = vmatmul.mubr.msk.f32.vlgmr.msra.gmra.mrb[0].mxu0 %vm124_vm1, %v378_v25 }
 0x1b5   :  { %v194_v33 = vpop.f32.mrb[0].mxu0 }
 0x1b6   :  { %v195_v34 = vadd.f32 %v314_v32, %v194_v33  ;;  %v340_v35 = vpop.f32.mrb[1].mxu0 }
 0x1b8   :  { %379 = vtanh.f32 %v195_v34 }
 0x1c2   :  { %v380_v36 = vpop.eup %379 }
 0x1c3   :  { %350 = vmatmul.mubr.msk.f32.vlgmr.msra.gmra.mrb[0].mxu1 %vm124_vm1, %v380_v36 }
 0x296   :  { %v279_v38 = vpop.f32.mrb[0].mxu1 }
 0x297   :  { %v280_v39 = vadd.f32 %v316_v37, %v279_v38  ;;  %v351_v40 = vpop.f32.mrb[1].mxu1 }
 0x299   :  { %381 = vtanh.f32 %v280_v39 }
 0x2a3   :  { %v382_v42 = vpop.eup %381 }
 0x2a4   :  { %v291_v43 = vmul.f32 %v382_v42, %v318_v41 }
 0x2a6   :  { %v292_v44 = vsel %vm124_vm1, %v291_v43, 0.0 }
 0x2a7   :  { %293 = vadd.xlane.f32.xlu1 %v292_v44 }
 0x334   :  { %v294_v46 = vpop.xlane.xlu1 %293 }
 0x335   :  { %v297_v47 = vadd.f32 %v296_v45, %v294_v46 }
 0x337   :  { %v319_v48 = vmul.f32 -1.442695, %v297_v47 }
 0x339   :  { %383 = vpow2.f32 %v319_v48 }
 0x343   :  { %v384_v49 = vpop.eup %383 }
 0x344   :  { %v301_v50 = vadd.f32 1.0, %v384_v49 }
 0x346   :  { %385 = vrcp.f32 %v301_v50 }
 0x350   :  { %v386_v51 = vpop.eup %385 }
 0x351   :  { %305 = vst.msk [vmem:[%s629_s9] sm:$0xff] %vm304_vm2, %v386_v51 }
 0x352   :  { %310 = vsyncpa [#allocation4], 1 }
 0x353   :  { %311 = vsyncpa [#allocation6], 1 }
 0x354   :  { %312 = vsyncpa [#allocation9], 1 }

</bundles_post_ra>
